<compile_context>
chip_gen: v7x
topology: tpu7x:2x2x1
jax: 0.10.0
libtpu: 0.0.40
codegen_flags: <defaults>
</compile_context>

<pallas_src>
import math
import functools

import jax
import jax.numpy as jnp
from jax import lax
from jax.experimental import pallas as pl
from jax.experimental.pallas import tpu as pltpu

_LANE = 128
_NEG_INF = -1e30  # finite "minus infinity": avoids inf-inf NaNs in the update


def _attention_head_kernel(
    q_in_ref,               # (tq, Din)   raw query tile (un-projected)
    kT_ref,                 # (Dp, tk)    projected K tile, pre-transposed (MXU-native)
    v_ref,                  # (tk, Dp)    projected V tile
    wq_ref, bq_ref,         # (Din, Dp), (1, Dp)   Q projection (resident)
    o_ref,                  # (tq, Dp)    output tile — same block across the Sk axis
    q_sc,                   # (tq, Dp)    scratch: pre-scaled Q projection (mxu dtype)
    m_sc,                   # (tq, 1) f32 scratch: running max
    l_sc,                   # (tq, 1) f32 scratch: running denom
    acc_sc,                 # (tq, Dp) f32 scratch: running numerator
    *,
    scale,
    sk_valid,
    mask_kv,
    mxu_dtype,
):
    j = pl.program_id(2)

    # ---- init per (batch, q-tile): project Q once, fold in the softmax scale ----
    @pl.when(j == 0)
    def _():
        q = jnp.dot(q_in_ref[...], wq_ref[...],
                    preferred_element_type=jnp.float32) + bq_ref[...]
        q_sc[...] = (q * scale).astype(q_sc.dtype)
        m_sc[...] = jnp.full_like(m_sc, _NEG_INF)
        l_sc[...] = jnp.zeros_like(l_sc)
        acc_sc[...] = jnp.zeros_like(acc_sc)

    # ---- scores = (scaled Q) @ K^T : (tq, Dp) @ (Dp, tk), MXU-native layout ----
    s = jnp.dot(q_sc[...], kT_ref[...], preferred_element_type=jnp.float32)

    if mask_kv:
        # Mask K positions that are sequence padding (set scores to -inf so
        # they contribute exp(..) == 0). Static Python branch: only emitted
        # when the padded length differs from the true length.
        tq_b, tk_b = s.shape
        col = lax.broadcasted_iota(jnp.int32, (tq_b, tk_b), 1) + j * tk_b
        s = jnp.where(col < sk_valid, s, _NEG_INF)

    # ---- online softmax update ----
    m_prev = m_sc[...]
    m_new = jnp.maximum(m_prev, jnp.max(s, axis=-1, keepdims=True))
    alpha = jnp.exp(m_prev - m_new)
    p = jnp.exp(s - m_new)                                      # (tq, tk) f32
    l_sc[...] = alpha * l_sc[...] + jnp.sum(p, axis=-1, keepdims=True)
    acc_sc[...] = alpha * acc_sc[...] + jnp.dot(
        p.astype(mxu_dtype), v_ref[...], preferred_element_type=jnp.float32)
    m_sc[...] = m_new

    # ---- finalize: normalize AFTER the PV matmul (Dp << Sk elementwise ops) ----
    @pl.when(j == pl.num_programs(2) - 1)
    def _():
        r = pl.reciprocal(l_sc[...], approx=True)   # EUP slot, ~free
        r = r * (2.0 - l_sc[...] * r)               # one Newton step -> ~f32 accuracy
        o_ref[...] = (acc_sc[...] * r).astype(o_ref.dtype)


def _round_up(x, m):
    return ((x + m - 1) // m) * m


def _pad_axis(x, axis, new_size):
    pad = new_size - x.shape[axis]
    if pad == 0:
        return x
    widths = [(0, 0)] * x.ndim
    widths[axis] = (0, pad)
    return jnp.pad(x, widths)


@functools.partial(jax.jit, static_argnames=("tq", "tk", "use_bf16_mxu"))
def attention_head(query, key, value, wq, bq, wk, bk, wv, bv, *,
                   tq=128, tk=128, use_bf16_mxu=None):
    """query: (B, Sq, Din); key/value: (B, Sk, Din); weights (dim_in, dim_out).

    use_bf16_mxu: feed K^T/V/q_sc/p to the MXU in bf16 (f32 accumulation kept).
    Defaults to True for bf16 inputs, False for f32 inputs (keeps the strict
    f32 numerics of the reference when the model itself is f32).
    """
    B, Sq, Din = query.shape
    _, Sk, _ = key.shape
    Dq = wq.shape[1]
    Dk = wk.shape[1]
    Dv = wv.shape[1]
    # scaled_dot_product_attention requires the Q and K projection dims to match
    # (the PyTorch module also projects V to dim_k).
    assert Dq == Dk == Dv, "AttentionHead requires dim_q == dim_k"

    if use_bf16_mxu is None:
        use_bf16_mxu = (query.dtype == jnp.bfloat16)
    mxu_dtype = jnp.bfloat16 if use_bf16_mxu else jnp.float32
    proj_precision = None if use_bf16_mxu else lax.Precision.HIGHEST

    # Zero-pad the projection dim to a 128-lane multiple: fills the MXU N dim
    # and makes output stores lane-dense. Zero columns don't change QK^T, the
    # softmax, or the valid output columns (sliced off below).
    Dp = _round_up(Dq, _LANE)
    wq_p = _pad_axis(wq, 1, Dp); bq_p = _pad_axis(bq.reshape(1, Dq), 1, Dp)
    wk_p = _pad_axis(wk, 1, Dp); bk_p = _pad_axis(bk.reshape(1, Dk), 1, Dp)
    wv_p = _pad_axis(wv, 1, Dp); bv_p = _pad_axis(bv.reshape(1, Dv), 1, Dp)

    # Tile sizes & sequence padding (replaces the old full-extent fallback).
    tq_eff = min(tq, _round_up(Sq, 8))
    tk_eff = min(tk, _round_up(Sk, _LANE))
    Sqp = _round_up(Sq, tq_eff)
    Skp = _round_up(Sk, tk_eff)

    q_pad = _pad_axis(query, 1, Sqp)
    k_pad = _pad_axis(key, 1, Skp)
    v_pad = _pad_axis(value, 1, Skp)

    # --- Hoisted K / V projections: one batched GEMM each (XLA), instead of
    # re-projecting every K/V tile once per q-tile inside the kernel. ---
    k_proj = (jnp.einsum("bsd,de->bse", k_pad, wk_p,
                         preferred_element_type=jnp.float32,
                         precision=proj_precision) + bk_p).astype(mxu_dtype)
    v_proj = (jnp.einsum("bsd,de->bse", v_pad, wv_p,
                         preferred_element_type=jnp.float32,
                         precision=proj_precision) + bv_p).astype(mxu_dtype)
    # Pre-transpose K once so the in-kernel QK^T is MXU-native (no per-step
    # transpose of the K tile): (B, Dp, Skp).
    k_projT = jnp.swapaxes(k_proj, 1, 2)

    grid = (B, Sqp // tq_eff, Skp // tk_eff)
    scale = 1.0 / math.sqrt(Dq)   # matches scaled_dot_product_attention (q dim)

    kernel = functools.partial(
        _attention_head_kernel,
        scale=scale, sk_valid=Sk, mask_kv=(Skp != Sk), mxu_dtype=mxu_dtype)

    out_padded = pl.pallas_call(
        kernel,
        out_shape=jax.ShapeDtypeStruct((B, Sqp, Dp), query.dtype),
        grid_spec=pltpu.PrefetchScalarGridSpec(
            num_scalar_prefetch=0,
            grid=grid,
            in_specs=[
                pl.BlockSpec((pl.Squeezed(), tq_eff, Din),
                             lambda b, i, j: (b, i, 0)),      # raw query tile
                pl.BlockSpec((pl.Squeezed(), Dp, tk_eff),
                             lambda b, i, j: (b, 0, j)),      # projected K^T tile
                pl.BlockSpec((pl.Squeezed(), tk_eff, Dp),
                             lambda b, i, j: (b, j, 0)),      # projected V tile
                # Resident Q-projection weights (constant block index -> DMA'd once).
                # NOTE: for very large Din on v7x consider pipeline_mode=pl.Buffered(1).
                pl.BlockSpec((Din, Dp), lambda b, i, j: (0, 0)),
                pl.BlockSpec((1, Dp), lambda b, i, j: (0, 0)),
            ],
            out_specs=pl.BlockSpec((pl.Squeezed(), tq_eff, Dp),
                                   lambda b, i, j: (b, i, 0)),
            scratch_shapes=[
                pltpu.VMEM((tq_eff, Dp), mxu_dtype),    # cached scaled Q projection
                pltpu.VMEM((tq_eff, 1), jnp.float32),   # running max
                pltpu.VMEM((tq_eff, 1), jnp.float32),   # running denom
                pltpu.VMEM((tq_eff, Dp), jnp.float32),  # running numerator
            ],
        ),
        compiler_params=pltpu.CompilerParams(
            # batch & q-tile axes parallel (megacore / dual TC), Sk is the reduction.
            dimension_semantics=("parallel", "parallel", "arbitrary"),
            vmem_limit_bytes=48 * 1024 * 1024,   # headroom under v7x's 64 MiB
        ),
    )(q_pad, k_projT, v_proj, wq_p, bq_p)

    out = out_padded
    if Sqp != Sq:
        out = out[:, :Sq, :]
    if Dp != Dk:
        out = out[..., :Dk]
    return out


def _init_linear(key, dim_in, dim_out, dtype=jnp.float32):
    """Mirror torch.nn.Linear init: uniform(-1/sqrt(in), 1/sqrt(in)).
    Weight returned pre-transposed as (dim_in, dim_out); bias (dim_out,)."""
    kw, kb = jax.random.split(key)
    bound = 1.0 / math.sqrt(dim_in)
    w = jax.random.uniform(kw, (dim_in, dim_out), dtype, minval=-bound, maxval=bound)
    b = jax.random.uniform(kb, (dim_out,), dtype, minval=-bound, maxval=bound)
    return w, b


def _reference(query, key, value, wq, bq, wk, bk, wv, bv):
    hp = lax.Precision.HIGHEST
    q = jnp.einsum("bsd,de->bse", query, wq, precision=hp) + bq
    k = jnp.einsum("bsd,de->bse", key, wk, precision=hp) + bk
    v = jnp.einsum("bsd,de->bse", value, wv, precision=hp) + bv
    scores = jnp.einsum("bqd,bkd->bqk", q, k, precision=hp) / math.sqrt(q.shape[-1])
    attn = jax.nn.softmax(scores, axis=-1)
    return jnp.einsum("bqk,bkd->bqd", attn, v, precision=hp)


if __name__ == "__main__":
    # Small shapes consistent with the module's forward pass. dim_q == dim_k is
    # required by scaled_dot_product_attention (and by this module's semantics).
    B, Sq, Sk, dim_in, dim_q, dim_k = 2, 8, 16, 32, 48, 48

    root = jax.random.PRNGKey(0)
    k_q, k_k, k_v, k_wq, k_wk, k_wv = jax.random.split(root, 6)

    query = jax.random.normal(k_q, (B, Sq, dim_in), jnp.float32)
    key_t = jax.random.normal(k_k, (B, Sk, dim_in), jnp.float32)
    value = jax.random.normal(k_v, (B, Sk, dim_in), jnp.float32)

    wq, bq = _init_linear(k_wq, dim_in, dim_q)
    wk, bk = _init_linear(k_wk, dim_in, dim_k)
    wv, bv = _init_linear(k_wv, dim_in, dim_k)

    ref = _reference(query, key_t, value, wq, bq, wk, bk, wv, bv)

    # f32 path (strict numerics): f32 MXU operands.
    out = attention_head(query, key_t, value, wq, bq, wk, bk, wv, bv)
    out = jax.block_until_ready(out)
    assert out.shape == (B, Sq, dim_k), out.shape
    assert jnp.allclose(out, ref, atol=1e-3, rtol=1e-3), \
        float(jnp.max(jnp.abs(out - ref)))

    # bf16-MXU path (the fast path for bf16 models): looser tolerance.
    out_bf = attention_head(query, key_t, value, wq, bq, wk, bk, wv, bv,
                            use_bf16_mxu=True)
    out_bf = jax.block_until_ready(out_bf)
    assert jnp.allclose(out_bf, ref, atol=3e-2, rtol=3e-2), \
        float(jnp.max(jnp.abs(out_bf - ref)))

    print("KERNEL_OK")
</pallas_src>

<mosaic_0001>
module attributes {stable_mosaic.version = 11 : i64} {
  func.func @_attention_head_kernel(%arg0: i32, %arg1: i32, %arg2: i32, %arg3: memref<1x8x32xf32, #tpu.memory_space<vmem>>, %arg4: memref<1x128x128xf32, #tpu.memory_space<vmem>>, %arg5: memref<1x128x128xf32, #tpu.memory_space<vmem>>, %arg6: memref<32x128xf32, #tpu.memory_space<vmem>>, %arg7: memref<1x128xf32, #tpu.memory_space<vmem>>, %arg8: memref<1x8x128xf32, #tpu.memory_space<vmem>>, %arg9: memref<8x128xf32, #tpu.memory_space<vmem>>, %arg10: memref<8x1xf32, #tpu.memory_space<vmem>>, %arg11: memref<8x1xf32, #tpu.memory_space<vmem>>, %arg12: memref<8x128xf32, #tpu.memory_space<vmem>>) attributes {dimension_semantics = [#tpu.dimension_semantics<parallel>, #tpu.dimension_semantics<parallel>, #tpu.dimension_semantics<arbitrary>], iteration_bounds = array<i64: 2, 1, 1>, scalar_prefetch = 0 : i64, scratch_operands = 4 : i64, tpu.core_type = #tpu.core_type<tc>, window_params = [{transform_indices = @transform_0, window_bounds = array<i64: 1, 8, 32>}, {transform_indices = @transform_1, window_bounds = array<i64: 1, 128, 128>}, {transform_indices = @transform_2, window_bounds = array<i64: 1, 128, 128>}, {pipeline_mode = #tpu.pipeline_mode<synchronous>, transform_indices = @transform_3, window_bounds = array<i64: 32, 128>}, {pipeline_mode = #tpu.pipeline_mode<synchronous>, transform_indices = @transform_4, window_bounds = array<i64: 1, 128>}, {transform_indices = @transform_5, window_bounds = array<i64: 1, 8, 128>}]} {
    %c0_i32 = arith.constant 0 : i32
    %0 = arith.cmpi eq, %arg2, %c0_i32 : i32
    %1 = arith.extui %0 : i1 to i32
    %c0_i32_0 = arith.constant 0 : i32
    %2 = arith.cmpi ne, %1, %c0_i32_0 : i32
    scf.if %2 {
      %c0_26 = arith.constant 0 : index
      %c0_27 = arith.constant 0 : index
      %c0_28 = arith.constant 0 : index
      %42 = vector.load %arg3[%c0_26, %c0_27, %c0_28] : memref<1x8x32xf32, #tpu.memory_space<vmem>>, vector<1x8x32xf32>
      %43 = vector.shape_cast %42 : vector<1x8x32xf32> to vector<8x32xf32>
      %c0_29 = arith.constant 0 : index
      %c0_30 = arith.constant 0 : index
      %44 = vector.load %arg6[%c0_29, %c0_30] : memref<32x128xf32, #tpu.memory_space<vmem>>, vector<32x128xf32>
      %cst_31 = arith.constant dense<0.000000e+00> : vector<8x128xf32>
      %45 = tpu.matmul %43, %44, %cst_31 {dimension_numbers = #tpu.dot_dimension_numbers<[1], [0], [0], [1], [0, 0, 1, 1], [], []>} : vector<8x32xf32>, vector<32x128xf32>, vector<8x128xf32> -> vector<8x128xf32>
      %c0_32 = arith.constant 0 : index
      %c0_33 = arith.constant 0 : index
      %46 = vector.load %arg7[%c0_32, %c0_33] : memref<1x128xf32, #tpu.memory_space<vmem>>, vector<1x128xf32>
      %47 = vector.broadcast %46 : vector<1x128xf32> to vector<8x128xf32>
      %48 = arith.addf %45, %47 : vector<8x128xf32>
      %cst_34 = arith.constant 0.144337565 : f32
      %49 = vector.broadcast %cst_34 : f32 to vector<8x128xf32>
      %50 = arith.mulf %48, %49 : vector<8x128xf32>
      %c0_35 = arith.constant 0 : index
      %c0_36 = arith.constant 0 : index
      %51 = vector.load %arg9[%c0_35, %c0_36] : memref<8x128xf32, #tpu.memory_space<vmem>>, vector<8x128xf32>
      tpu.vector_store %arg9[%c0_35, %c0_36], %50 {strides = array<i32>} : memref<8x128xf32, #tpu.memory_space<vmem>>, vector<8x128xf32>,
      %cst_37 = arith.constant -1.000000e+30 : f32
      %52 = vector.broadcast %cst_37 : f32 to vector<8x1xf32>
      %c0_38 = arith.constant 0 : index
      %c0_39 = arith.constant 0 : index
      %53 = vector.load %arg10[%c0_38, %c0_39] : memref<8x1xf32, #tpu.memory_space<vmem>>, vector<8x1xf32>
      tpu.vector_store %arg10[%c0_38, %c0_39], %52 {strides = array<i32>} : memref<8x1xf32, #tpu.memory_space<vmem>>, vector<8x1xf32>,
      %cst_40 = arith.constant 0.000000e+00 : f32
      %54 = vector.broadcast %cst_40 : f32 to vector<8x1xf32>
      %c0_41 = arith.constant 0 : index
      %c0_42 = arith.constant 0 : index
      %55 = vector.load %arg11[%c0_41, %c0_42] : memref<8x1xf32, #tpu.memory_space<vmem>>, vector<8x1xf32>
      tpu.vector_store %arg11[%c0_41, %c0_42], %54 {strides = array<i32>} : memref<8x1xf32, #tpu.memory_space<vmem>>, vector<8x1xf32>,
      %cst_43 = arith.constant 0.000000e+00 : f32
      %56 = vector.broadcast %cst_43 : f32 to vector<8x128xf32>
      %c0_44 = arith.constant 0 : index
      %c0_45 = arith.constant 0 : index
      %57 = vector.load %arg12[%c0_44, %c0_45] : memref<8x128xf32, #tpu.memory_space<vmem>>, vector<8x128xf32>
      tpu.vector_store %arg12[%c0_44, %c0_45], %56 {strides = array<i32>} : memref<8x128xf32, #tpu.memory_space<vmem>>, vector<8x128xf32>,
    } else {
    }
    %c0 = arith.constant 0 : index
    %c0_1 = arith.constant 0 : index
    %3 = vector.load %arg9[%c0, %c0_1] : memref<8x128xf32, #tpu.memory_space<vmem>>, vector<8x128xf32>
    %c0_2 = arith.constant 0 : index
    %c0_3 = arith.constant 0 : index
    %c0_4 = arith.constant 0 : index
    %4 = vector.load %arg4[%c0_2, %c0_3, %c0_4] : memref<1x128x128xf32, #tpu.memory_space<vmem>>, vector<1x128x128xf32>
    %5 = vector.shape_cast %4 : vector<1x128x128xf32> to vector<128x128xf32>
    %cst = arith.constant dense<0.000000e+00> : vector<8x128xf32>
    %6 = tpu.matmul %3, %5, %cst {dimension_numbers = #tpu.dot_dimension_numbers<[1], [0], [0], [1], [0, 0, 1, 1], [], []>} : vector<8x128xf32>, vector<128x128xf32>, vector<8x128xf32> -> vector<8x128xf32>
    %7 = tpu.iota {dimensions = array<i32: 1>} : vector<8x128xi32>
    %c128_i32 = arith.constant 128 : i32
    %8 = arith.muli %arg2, %c128_i32 : i32
    %9 = vector.broadcast %8 : i32 to vector<8x128xi32>
    %10 = arith.addi %7, %9 : vector<8x128xi32>
    %c16_i32 = arith.constant 16 : i32
    %11 = vector.broadcast %c16_i32 : i32 to vector<8x128xi32>
    %12 = arith.cmpi slt, %10, %11 : vector<8x128xi32>
    %cst_5 = arith.constant -1.000000e+30 : f32
    %13 = vector.broadcast %cst_5 : f32 to vector<8x128xf32>
    %14 = arith.select %12, %6, %13 : vector<8x128xi1>, vector<8x128xf32>
    %c0_6 = arith.constant 0 : index
    %c0_7 = arith.constant 0 : index
    %15 = vector.load %arg10[%c0_6, %c0_7] : memref<8x1xf32, #tpu.memory_space<vmem>>, vector<8x1xf32>
    %cst_8 = arith.constant dense<0xFF800000> : vector<8xf32>
    %16 = vector.multi_reduction <maximumf>, %14, %cst_8 [1] : vector<8x128xf32> to vector<8xf32>
    %17 = vector.shape_cast %16 : vector<8xf32> to vector<8x1xf32>
    %18 = arith.maximumf %15, %17 : vector<8x1xf32>
    %19 = arith.subf %15, %18 : vector<8x1xf32>
    %20 = math.exp %19 : vector<8x1xf32>
    %21 = vector.broadcast %18 : vector<8x1xf32> to vector<8x128xf32>
    %22 = arith.subf %14, %21 : vector<8x128xf32>
    %23 = math.exp %22 : vector<8x128xf32>
    %c0_9 = arith.constant 0 : index
    %c0_10 = arith.constant 0 : index
    %24 = vector.load %arg11[%c0_9, %c0_10] : memref<8x1xf32, #tpu.memory_space<vmem>>, vector<8x1xf32>
    %25 = arith.mulf %20, %24 : vector<8x1xf32>
    %cst_11 = arith.constant dense<0.000000e+00> : vector<8xf32>
    %26 = vector.multi_reduction <add>, %23, %cst_11 [1] : vector<8x128xf32> to vector<8xf32>
    %27 = vector.shape_cast %26 : vector<8xf32> to vector<8x1xf32>
    %28 = arith.addf %25, %27 : vector<8x1xf32>
    %c0_12 = arith.constant 0 : index
    %c0_13 = arith.constant 0 : index
    %29 = vector.load %arg11[%c0_12, %c0_13] : memref<8x1xf32, #tpu.memory_space<vmem>>, vector<8x1xf32>
    tpu.vector_store %arg11[%c0_12, %c0_13], %28 {strides = array<i32>} : memref<8x1xf32, #tpu.memory_space<vmem>>, vector<8x1xf32>,
    %c0_14 = arith.constant 0 : index
    %c0_15 = arith.constant 0 : index
    %30 = vector.load %arg12[%c0_14, %c0_15] : memref<8x128xf32, #tpu.memory_space<vmem>>, vector<8x128xf32>
    %31 = vector.broadcast %20 : vector<8x1xf32> to vector<8x128xf32>
    %32 = arith.mulf %31, %30 : vector<8x128xf32>
    %c0_16 = arith.constant 0 : index
    %c0_17 = arith.constant 0 : index
    %c0_18 = arith.constant 0 : index
    %33 = vector.load %arg5[%c0_16, %c0_17, %c0_18] : memref<1x128x128xf32, #tpu.memory_space<vmem>>, vector<1x128x128xf32>
    %34 = vector.shape_cast %33 : vector<1x128x128xf32> to vector<128x128xf32>
    %cst_19 = arith.constant dense<0.000000e+00> : vector<8x128xf32>
    %35 = tpu.matmul %23, %34, %cst_19 {dimension_numbers = #tpu.dot_dimension_numbers<[1], [0], [0], [1], [0, 0, 1, 1], [], []>} : vector<8x128xf32>, vector<128x128xf32>, vector<8x128xf32> -> vector<8x128xf32>
    %36 = arith.addf %32, %35 : vector<8x128xf32>
    %c0_20 = arith.constant 0 : index
    %c0_21 = arith.constant 0 : index
    %37 = vector.load %arg12[%c0_20, %c0_21] : memref<8x128xf32, #tpu.memory_space<vmem>>, vector<8x128xf32>
    tpu.vector_store %arg12[%c0_20, %c0_21], %36 {strides = array<i32>} : memref<8x128xf32, #tpu.memory_space<vmem>>, vector<8x128xf32>,
    %c0_22 = arith.constant 0 : index
    %c0_23 = arith.constant 0 : index
    %38 = vector.load %arg10[%c0_22, %c0_23] : memref<8x1xf32, #tpu.memory_space<vmem>>, vector<8x1xf32>
    tpu.vector_store %arg10[%c0_22, %c0_23], %18 {strides = array<i32>} : memref<8x1xf32, #tpu.memory_space<vmem>>, vector<8x1xf32>,
    %c0_i32_24 = arith.constant 0 : i32
    %39 = arith.cmpi eq, %arg2, %c0_i32_24 : i32
    %40 = arith.extui %39 : i1 to i32
    %c0_i32_25 = arith.constant 0 : i32
    %41 = arith.cmpi ne, %40, %c0_i32_25 : i32
    scf.if %41 {
      %c0_26 = arith.constant 0 : index
      %c0_27 = arith.constant 0 : index
      %42 = vector.load %arg11[%c0_26, %c0_27] : memref<8x1xf32, #tpu.memory_space<vmem>>, vector<8x1xf32>
      %43 = tpu.reciprocal %42 {approx = true} : vector<8x1xf32> -> vector<8x1xf32>
      %c0_28 = arith.constant 0 : index
      %c0_29 = arith.constant 0 : index
      %44 = vector.load %arg11[%c0_28, %c0_29] : memref<8x1xf32, #tpu.memory_space<vmem>>, vector<8x1xf32>
      %45 = arith.mulf %44, %43 : vector<8x1xf32>
      %cst_30 = arith.constant 2.000000e+00 : f32
      %46 = vector.broadcast %cst_30 : f32 to vector<8x1xf32>
      %47 = arith.subf %46, %45 : vector<8x1xf32>
      %48 = arith.mulf %43, %47 : vector<8x1xf32>
      %c0_31 = arith.constant 0 : index
      %c0_32 = arith.constant 0 : index
      %49 = vector.load %arg12[%c0_31, %c0_32] : memref<8x128xf32, #tpu.memory_space<vmem>>, vector<8x128xf32>
      %50 = vector.broadcast %48 : vector<8x1xf32> to vector<8x128xf32>
      %51 = arith.mulf %49, %50 : vector<8x128xf32>
      %c0_33 = arith.constant 0 : index
      %c0_34 = arith.constant 0 : index
      %c0_35 = arith.constant 0 : index
      %52 = vector.load %arg8[%c0_33, %c0_34, %c0_35] : memref<1x8x128xf32, #tpu.memory_space<vmem>>, vector<1x8x128xf32>
      %53 = vector.shape_cast %52 : vector<1x8x128xf32> to vector<8x128xf32>
      %54 = vector.shape_cast %51 : vector<8x128xf32> to vector<1x8x128xf32>
      tpu.vector_store %arg8[%c0_33, %c0_34, %c0_35], %54 {strides = array<i32>} : memref<1x8x128xf32, #tpu.memory_space<vmem>>, vector<1x8x128xf32>,
    } else {
    }
    return
  }
  func.func @transform_0(%arg0: i32, %arg1: i32, %arg2: i32) -> (i32, i32, i32) {
    %c0_i32 = arith.constant 0 : i32
    %c0_i32_0 = arith.constant 0 : i32
    return %arg0, %arg1, %c0_i32 : i32, i32, i32
  }
  func.func @transform_1(%arg0: i32, %arg1: i32, %arg2: i32) -> (i32, i32, i32) {
    %c0_i32 = arith.constant 0 : i32
    %c0_i32_0 = arith.constant 0 : i32
    return %arg0, %c0_i32, %arg2 : i32, i32, i32
  }
  func.func @transform_2(%arg0: i32, %arg1: i32, %arg2: i32) -> (i32, i32, i32) {
    %c0_i32 = arith.constant 0 : i32
    %c0_i32_0 = arith.constant 0 : i32
    return %arg0, %arg2, %c0_i32 : i32, i32, i32
  }
  func.func @transform_3(%arg0: i32, %arg1: i32, %arg2: i32) -> (i32, i32) {
    %c0_i32 = arith.constant 0 : i32
    %c0_i32_0 = arith.constant 0 : i32
    %c0_i32_1 = arith.constant 0 : i32
    return %c0_i32, %c0_i32_0 : i32, i32
  }
  func.func @transform_4(%arg0: i32, %arg1: i32, %arg2: i32) -> (i32, i32) {
    %c0_i32 = arith.constant 0 : i32
    %c0_i32_0 = arith.constant 0 : i32
    %c0_i32_1 = arith.constant 0 : i32
    return %c0_i32, %c0_i32_0 : i32, i32
  }
  func.func @transform_5(%arg0: i32, %arg1: i32, %arg2: i32) -> (i32, i32, i32) {
    %c0_i32 = arith.constant 0 : i32
    %c0_i32_0 = arith.constant 0 : i32
    return %arg0, %arg1, %c0_i32 : i32, i32, i32
  }
}

</mosaic_0001>

<bundles_post_ra>
// kernel: attention_head.1
= control target key start
LH: loop header
LB: loop body
LE: loop exit
PB: predicated region body
PF: predicated region fallthrough
CT: control target
= control target key end

     0   :  { %10 = vsyncpa [#allocation7], 0  ;;  %s1347_s0 = inlined_call_operand.vmem [shape: f32[2,8,32], index: 0, kind: input, shape index: {}]   ;;  %s1348_s1 = inlined_call_operand.vmem [shape: f32[2,128,128], index: 1, kind: input, shape index: {}]   ;;  %s1349_s2 = inlined_call_operand.vmem [shape: f32[2,128,128], index: 2, kind: input, shape index: {}]   ;;  %s1350_s3 = inlined_call_operand.vmem [shape: f32[32,128], index: 3, kind: input, shape index: {}]   ;;  %s1351_s4 = inlined_call_operand.vmem [shape: f32[1,128], index: 4, kind: input, shape index: {}]   ;;  %s1352_s5 = inlined_call_operand.hbm [shape: f32[2,8,128], index: 5, kind: output, shape index: {}]  }
   0x1   :  { %12 = vsyncpa [#allocation7 + $0x1], 0  ;;  %s1145_s18 = smov 0   ;;  %s1147_s19 = smov 0  }
   0x2   :  { %s1149_s20 = smov 0   ;;  %s1151_s21 = smov 0  }
   0x3   :  { %s1153_s22 = smov 0   ;;  %s1155_s23 = smov 0  }
   0x4 LB: > { %s768_s24 = sadd.s32 4294967295, %s1107_s23   ;;  %s769_s25 = sadd.s32 4294967294, %s1107_s23   ;;  %s1107_s23 = sphi %s1155_s23, %s18_s23   ;;  %s1103_s22 = sphi %s1153_s22, %s1359_s22   ;;  %s1099_s21 = sphi %s1151_s21, %s1358_s21   ;;  %s1095_s20 = sphi %s1149_s20, %s1357_s20   ;;  %s1091_s19 = sphi %s1147_s19, %s1356_s19   ;;  %s1087_s18 = sphi %s1145_s18, %s1355_s18  }
   0x5   : > { %s37_s26 = sadd.s32 1, %s1103_s22  ;;  %s172_s27 = sadd.s32 1, %s1095_s20 }
   0x6   : > { %p39_p0 = scmp.ge.s32.totalorder %s37_s26, 2  ;;  %p182_p1 = scmp.ne.s32.totalorder %s1095_s20, %s1091_s19 }
   0x7   : > { %p183_p2 = scmp.eq.s32.totalorder %s768_s24, 1  ;;  %p188_p3 = scmp.ne.s32.totalorder %s1091_s19, %s1087_s18 }
   0x8   : > { %s1361_s26 = smov (%p39_p0, %s37_s26), 0  ;;  %p189_p5 = scmp.eq.s32.totalorder %s769_s25, 1 }
   0x9   : > { %p1185_p4 = por %p183_p2, %p182_p1  ;;  %s167_s29 = ssub.s32 %s1103_s22, %s1361_s26 }
   0xa   : > { %p772_p6 = scmp.ge.s32.totalorder %s1107_s23, 1  ;;  %p170_p7 = scmp.eq.s32.totalorder %s167_s29, 0 }
   0xb   : > { %p1192_p8 = por %p189_p5, %p188_p3  ;;  %p247_p9 = scmp.lt.s32.totalorder %s1107_s23, 3 }
   0xc   : > { %s1198_s6 = scalar_select %p170_p7, %s1095_s20, %s172_s27  }
   0xd   : > { %p248_p10 = pnand %p772_p6, %p247_p9 }
   0xe   : > { %v324_v0 = vld [vmem:[%s1350_s3] sm:$0xff] (!%p248_p10)  ;;  %v325_v1 = vld [vmem:[%s1350_s3 + $0x8] sm:$0xff] (!%p248_p10)  ;;  %v326_v2 = vld [vmem:[%s1350_s3 + $0x10] sm:$0xff] (!%p248_p10)  ;;  %v1109_v3 = vmov (!%p248_p10), 0.0|0.0   ;;  %vm1110_vm0 = vmmov (!%p248_p10), 0   ;;  %v1111_v6 = vmov (!%p248_p10), 0.0   ;;  %v502_v39 = vlaneseq (!%p248_p10) }
   0xf   : > { %251 = sbr.rel (%p248_p10) target bundleno = 1056 (0x420), region = 40  ;;  %907 = vmatprep.subr.bf16.mxu0 (!%p248_p10), %v1109_v3  ;;  %v908_v4 = vpack.c.bf16 (!%p248_p10), %v325_v1, %v324_v0  ;;  %v327_v5 = vld [vmem:[%s1350_s3 + $0x18] sm:$0xff] (!%p248_p10)  ;;  %834 = vmatprep.mubr.msk.f32.mxu0 (!%p248_p10), %vm1110_vm0, %v1111_v6  ;;  %vm411_vm1 = vcmask (!%p248_p10), 7168   ;;  %p294_p11 = scmp.lt.s32.totalorder (!%p248_p10), %s1099_s21, 1  ;;  %vm335_vm2 = vcmask (!%p248_p10), 261120   ;;  %v1113_v44 = vmov (!%p248_p10), 0  }
  0x10   : > { %413 = vst.msk [vmem:[#allocation4] sm:$0xff] (!%p248_p10), %vm411_vm1, %v1111_v6  ;;  %913 = vmatprep.subr.bf16.mxu1 (!%p248_p10), %v1109_v3  ;;  %869 = vmatprep.mubr.msk.f32.mxu1 (!%p248_p10), %vm1110_vm0, %v1111_v6  ;;  %v911_v7 = vpack.c.bf16 (!%p248_p10), %v327_v5, %v326_v2  ;;  %v779_v33 = vld [vmem:[%s1351_s4] ss:$0 sm:$0xff] (!%p248_p10)  ;;  %v1112_v38 = vmov (!%p248_p10), -1e+30   ;;  %v503_v40 = vand.u32 (!%p248_p10), 127, %v502_v39 }
  0x11   : > { %909 = vmatpush3.bf16.msra.mxu0 (!%p248_p10), %v908_v4  ;;  %412 = vst.msk [vmem:[#allocation3] sm:$0xff] (!%p248_p10), %vm411_vm1, %v1112_v38  ;;  %1021 = vset.pattern.permute.xlu0 (!%p248_p10), %v1113_v44  ;;  %s291_s14 = sand.u32 (!%p248_p10), 1, %s1091_s19  }
  0x12   : > { %910 = vmatprep.subr.bf16.mxu0 (!%p248_p10), %v1109_v3  ;;  %vm507_vm3 = vcmp.lt.s32.totalorder (!%p248_p10), %v503_v40, 16  ;;  %1022 = vset.pattern.permute.xlu1 (!%p248_p10), %v1113_v44  ;;  %s644_s7 = scalar_lea.sflag (!%p248_p10), [#allocation7], %s291_s14 }
  0x15   : > { %912 = vmatpush3.bf16.msra.mxu0 (!%p248_p10), %v911_v7 }
  0x16   : > { %s1219_s15 = scalar_select %p294_p11, %s1099_s21, 1  ;;  %937 = vmatprep.subr.bf16.mxu0 %v1109_v3 }
  0x18   : > { %s774_s16 = sshll.u32 %s1219_s15, 3  ;;  %s785_s17 = sshll.u32 %s1219_s15, 7  ;;  %v509_v57 = vld [vmem:[#allocation3] sm:$0xff] }
  0x19   : > { %s300_s27 = scalar_lea.vmem %s1347_s0, %s774_s16  ;;  %s1232_s8 = scalar_lea.vmem %s1348_s1, %s785_s17 }
  0x1a   : > { %v323_v8 = vld [vmem:[%s300_s27] sm:$0xff]  ;;  %v417_v10 = vld [vmem:[%s1232_s8 + $0x8] sm:$0xff]  ;;  %v418_v12 = vld [vmem:[%s1232_s8 + $0x10] sm:$0xff]  ;;  %s1268_s13 = scalar_lea.vmem %s1349_s2, %s785_s17  ;;  %s773_s15 = sshll.u32 %s291_s14, 3 }
  0x1b   : > { %v416_v9 = vld [vmem:[%s1232_s8] sm:$0xff]  ;;  %v419_v13 = vld [vmem:[%s1232_s8 + $0x18] sm:$0xff]  ;;  %835 = vmatmul.mubr.msk.f32.vlgmr.msra.gmra.mrb[0].mxu0 %vm335_vm2, %v323_v8  ;;  %v421_v16 = vld [vmem:[%s1232_s8 + $0x28] sm:$0xff]  ;;  %s782_s16 = sshll.u32 %s1099_s21, 7  ;;  %s293_s17 = scalar_lea.vmem [#allocation6], %s773_s15 }
  0x1c   : > { %v914_v11 = vpack.c.bf16 %v417_v10, %v416_v9  ;;  %v917_v14 = vpack.c.bf16 %v419_v13, %v418_v12  ;;  %v420_v15 = vld [vmem:[%s1232_s8 + $0x20] sm:$0xff]  ;;  %904 = vmatprep.mubr.msk.f32.mxu0 %vm1110_vm0, %v1111_v6  ;;  %v422_v18 = vld [vmem:[%s1232_s8 + $0x30] sm:$0xff]  ;;  %v423_v19 = vld [vmem:[%s1232_s8 + $0x38] sm:$0xff]  ;;  %s658_s24 = sshll.u32 %s293_s17, 4  ;;  %s1300_s29 = scalar_lea.hbm %s1352_s5, %s782_s16  ;;  %s1302_s24 = int_to_ptr.vmem [resolvable:$true] %s658_s24 }
  0x1d   : > { %v920_v17 = vpack.c.bf16 %v421_v16, %v420_v15  ;;  %v923_v20 = vpack.c.bf16 %v423_v19, %v422_v18  ;;  %v424_v21 = vld [vmem:[%s1232_s8 + $0x40] sm:$0xff]  ;;  %v425_v22 = vld [vmem:[%s1232_s8 + $0x48] sm:$0xff]  ;;  %v426_v24 = vld [vmem:[%s1232_s8 + $0x50] sm:$0xff]  ;;  %s1114_s21 = smov [#allocation6]  }
  0x1e   : > { %915 = vmatpush3.bf16.msra.mxu1 %v914_v11  ;;  %v926_v23 = vpack.c.bf16 %v425_v22, %v424_v21  ;;  %v427_v25 = vld [vmem:[%s1232_s8 + $0x58] sm:$0xff]  ;;  %v428_v27 = vld [vmem:[%s1232_s8 + $0x60] sm:$0xff]  ;;  %v429_v28 = vld [vmem:[%s1232_s8 + $0x68] sm:$0xff]  ;;  %s1033_s9 = sshll.u32 %s1114_s21, 4  ;;  %s1034_s9 = int_to_ptr.vmem [resolvable:$false] %s1033_s9 }
  0x1f   : > { %916 = vmatprep.subr.bf16.mxu1 %v1109_v3  ;;  %v929_v26 = vpack.c.bf16 %v427_v25, %v426_v24  ;;  %v932_v29 = vpack.c.bf16 %v429_v28, %v428_v27  ;;  %v430_v30 = vld [vmem:[%s1232_s8 + $0x70] sm:$0xff]  ;;  %v431_v31 = vld [vmem:[%s1232_s8 + $0x78] sm:$0xff]  ;;  %v538_v45 = vld [vmem:[%s1268_s13] sm:$0xff]  ;;  %s1029_s8 = scalar_lea.vmem %s1302_s24, 128  ;;  %s1035_s10 = scalar_lea.vmem %s1034_s9, 256 }
  0x20   : > { %v935_v32 = vpack.c.bf16 %v431_v31, %v430_v30  ;;  %v539_v46 = vld [vmem:[%s1268_s13 + $0x8] sm:$0xff]  ;;  %v540_v47 = vld [vmem:[%s1268_s13 + $0x10] sm:$0xff]  ;;  %v541_v49 = vld [vmem:[%s1268_s13 + $0x18] sm:$0xff]  ;;  %p1030_p12 = scmp.ne.s32.totalorder %s1302_s24, %s1029_s8  ;;  %p1036_p1 = scmp.lt.s32.totalorder %s1302_s24, %s1034_s9 }
  0x21   : > { %v938_v48 = vpack.c.bf16 %v539_v46, %v538_v45  ;;  %v941_v50 = vpack.c.bf16 %v541_v49, %v540_v47  ;;  %v542_v51 = vld [vmem:[%s1268_s13 + $0x20] sm:$0xff]  ;;  %v543_v52 = vld [vmem:[%s1268_s13 + $0x28] sm:$0xff]  ;;  %v544_v54 = vld [vmem:[%s1268_s13 + $0x30] sm:$0xff]  ;;  %p1037_p2 = scmp.lt.s32.totalorder %s1035_s10, %s1029_s8 }
  0x22   : > { %918 = vmatpush3.bf16.msra.mxu1 %v917_v14  ;;  %v944_v53 = vpack.c.bf16 %v543_v52, %v542_v51  ;;  %v545_v55 = vld [vmem:[%s1268_s13 + $0x38] sm:$0xff]  ;;  %v546_v59 = vld [vmem:[%s1268_s13 + $0x40] sm:$0xff]  ;;  %v547_v60 = vld [vmem:[%s1268_s13 + $0x48] sm:$0xff]  ;;  %p1031_p13 = pnand %p1030_p12, %p1185_p4 }
  0x23   : > { %919 = vmatprep.subr.bf16.mxu1 %v1109_v3  ;;  %939 = vmatpush3.bf16.msra.mxu0 %v938_v48  ;;  %v947_v56 = vpack.c.bf16 %v545_v55, %v544_v54  ;;  %v950_v62 = vpack.c.bf16 %v547_v60, %v546_v59  ;;  %v548_v0 = vld [vmem:[%s1268_s13 + $0x50] sm:$0xff]  ;;  %v549_v1 = vld [vmem:[%s1268_s13 + $0x58] sm:$0xff]  ;;  %v550_v4 = vld [vmem:[%s1268_s13 + $0x60] sm:$0xff]  ;;  %p1038_p3 = por %p1037_p2, %p1036_p1 }
  0x24   : > { %940 = vmatprep.subr.bf16.mxu0 %v1109_v3  ;;  %v953_v2 = vpack.c.bf16 %v549_v1, %v548_v0  ;;  %v551_v5 = vld [vmem:[%s1268_s13 + $0x68] sm:$0xff]  ;;  %v552_v7 = vld [vmem:[%s1268_s13 + $0x70] sm:$0xff]  ;;  %v553_v8 = vld [vmem:[%s1268_s13 + $0x78] sm:$0xff]  ;;  %p1032_p0 = pneg %p1031_p13 }
  0x25   : > { %v956_v6 = vpack.c.bf16 %v551_v5, %v550_v4  ;;  %v959_v9 = vpack.c.bf16 %v553_v8, %v552_v7  ;;  %v524_v16 = vld [vmem:[#allocation4] sm:$0xff] }
  0x26   : > { %921 = vmatpush3.bf16.msra.mxu1 %v920_v17  ;;  %p1039_p5 = pnand %p1038_p3, %p1032_p0 }
  0x27   : > { %922 = vmatprep.subr.bf16.mxu1 %v1109_v3  ;;  %942 = vmatpush3.bf16.msra.mxu0 %v941_v50 }
  0x28   : > { %943 = vmatprep.subr.bf16.mxu0 %v1109_v3 }
  0x2a   : > { %924 = vmatpush3.bf16.msra.mxu1 %v923_v20 }
  0x2b   : > { %925 = vmatprep.subr.bf16.mxu1 %v1109_v3  ;;  %945 = vmatpush3.bf16.msra.mxu0 %v944_v53 }
  0x2c   : > { %946 = vmatprep.subr.bf16.mxu0 %v1109_v3 }
  0x2e   : > { %927 = vmatpush3.bf16.msra.mxu1 %v926_v23 }
  0x2f   : > { %928 = vmatprep.subr.bf16.mxu1 %v1109_v3  ;;  %948 = vmatpush3.bf16.msra.mxu0 %v947_v56 }
  0x30   : > { %949 = vmatprep.subr.bf16.mxu0 %v1109_v3 }
  0x32   : > { %930 = vmatpush3.bf16.msra.mxu1 %v929_v26 }
  0x33   : > { %931 = vmatprep.subr.bf16.mxu1 %v1109_v3  ;;  %951 = vmatpush3.bf16.msra.mxu0 %v950_v62 }
  0x34   : > { %952 = vmatprep.subr.bf16.mxu0 %v1109_v3 }
  0x36   : > { %933 = vmatpush3.bf16.msra.mxu1 %v932_v29 }
  0x37   : > { %934 = vmatprep.subr.bf16.mxu1 %v1109_v3  ;;  %954 = vmatpush3.bf16.msra.mxu0 %v953_v2 }
  0x38   : > { %955 = vmatprep.subr.bf16.mxu0 %v1109_v3 }
  0x3a   : > { %936 = vmatpush3.bf16.msra.mxu1 %v935_v32 }
  0x3b   : > { %957 = vmatpush3.bf16.msra.mxu0 %v956_v6 }
  0x3c   : > { %958 = vmatprep.subr.bf16.mxu0 %v1109_v3 }
  0x3f   : > { %960 = vmatpush3.bf16.msra.mxu0 %v959_v9 }
  0xee   : > { %v405_v34 = vpop.f32.mrb[0].mxu0 }
  0xef   : > { %v406_v35 = vadd.f32 %v779_v33, %v405_v34  ;;  %v836_v36 = vpop.f32.mrb[1].mxu0 }
  0xf1   : > { %v409_v37 = vmul.f32 0.14433756, %v406_v35 }
  0xf3   : > { %870 = vmatmul.mubr.f32.vlgmr.msra.gmra.mrb[0].mxu1 %v409_v37 }
 0x1c6   : > { %v498_v41 = vpop.f32.mrb[0].mxu1 }
 0x1c7   : > { %v871_v42 = vpop.f32.mrb[1].mxu1  ;;  %v508_v43 = vsel %vm507_vm3, %v498_v41, -1e+30 }
 0x1c8   : > { %510 = vmax.xlane.f32.xlu0 %v508_v43 }
 0x255   : > { %v511_v58 = vpop.xlane.xlu0 %510 }
 0x256   : > { %v512_v61 = vmax.f32 %v509_v57, %v511_v58 }
 0x258   : > { %v513_v63 = vsub.f32 %v509_v57, %v512_v61  ;;  %626 = vst.msk [vmem:[#allocation3] sm:$0xff] %vm411_vm1, %v512_v61  ;;  %518 = vperm.xlu0 %1021, %v512_v61  }
 0x25a   : > { %v514_v14 = vmul.f32 1.442695, %v513_v63 }
 0x2d7   : > { %v519_v10 = vpop.permute.xlu0 %518 }
 0x2d8   : > { %v521_v11 = vsub.f32 %v508_v43, %v519_v10 }
 0x2da   : > { %v522_v12 = vmul.f32 1.442695, %v521_v11 }
 0x2dc   : > { %1023 = vpow2.f32 %v522_v12 }
 0x2dd   : > { %1025 = vpow2.f32 %v514_v14 }
 0x2e6   : > { %v1024_v13 = vpop.eup %1023 }
 0x2e7   : > { %526 = vadd.xlane.f32.xlu1 %v1024_v13  ;;  %905 = vmatmul.mubr.f32.vlgmr.msra.gmra.mrb[2].mxu0 %v1024_v13  ;;  %v1026_v15 = vpop.eup %1025 }
 0x2e8   : > { %v525_v17 = vmul.f32 %v1026_v15, %v524_v16 }
 0x2f8   : > { %534 = vperm.xlu1 %1022, %v1026_v15  }
 0x374   : > { %v527_v18 = vpop.xlane.xlu1 %526 }
 0x375   : > { %v528_v19 = vadd.f32 %v527_v18, %v525_v17 }
 0x377   : > { %530 = vst.msk [vmem:[#allocation4] sm:$0xff] %vm411_vm1, %v528_v19 }
 0x378   : > { %v535_v26 = vpop.permute.xlu1 %534 }
 0x379   : > { %v537_v27 = vmul.f32 0.0, %v535_v26 }
 0x37e   : > { %v630_v3 = vld [vmem:[#allocation4] sm:$0xff] }
 0x37f   : > { %1027 = vrcp.f32 %v630_v3 }
 0x389   : > { %v1028_v20 = vpop.eup %1027 }
 0x38a   : > { %v632_v21 = vmul.f32 %v1028_v20, %v630_v3 }
 0x38c   : > { %v633_v22 = vsub.f32 2.0, %v632_v21 }
 0x38e   : > { %v634_v23 = vmul.f32 %v1028_v20, %v633_v22 }
 0x390   : > { %638 = vperm.xlu1 %1022, %v634_v23  }
 0x3ba   : > { %v620_v24 = vpop.f32.mrb[2].mxu0 }
 0x3bb   : > { %v906_v25 = vpop.f32.mrb[3].mxu0  ;;  %v624_v28 = vadd.f32 %v620_v24, %v537_v27 }
 0x40f   : > { %v639_v29 = vpop.permute.xlu1 %638 }
 0x410   : > { %v641_v30 = vmul.f32 %v639_v29, %v624_v28 }
 0x412   : > { %642 = vst [vmem:[%s293_s17] sm:$0xff] %v641_v30 }
 0x413   : > { %1042 = shalt.err (!%p1039_p5)
}
 0x414   : > { %s1043_s11 = scalar_lea.hbm %s1300_s29, 128  ;;  %s1047_s14 = scalar_lea.hbm %s1352_s5, 256 }
 0x415   : > { %p1044_p6 = scmp.ne.s32.totalorder %s1300_s29, %s1043_s11  ;;  %p1048_p10 = scmp.lt.u32.totalorder %s1300_s29, %s1352_s5 }
 0x416   : > { %p1049_p11 = scmp.lt.u32.totalorder %s1047_s14, %s1043_s11  ;;  %p1051_p13 = scmp.lt.u32.totalorder %s1043_s11, %s1300_s29 }
 0x417   : > { %p1045_p7 = pnand %p1044_p6, %p1185_p4 }
 0x418   : > { %p1050_p12 = por %p1049_p11, %p1048_p10 }
 0x419   : > { %p1046_p9 = pneg %p1045_p7 }
 0x41a   : > { %p1052_p0 = por %p1051_p13, %p1050_p12 }
 0x41c   : > { %p1053_p1 = pnand %p1052_p0, %p1046_p9 }
 0x41e   : > { %1056 = shalt.err (!%p1053_p1)
}
 0x41f   : > { %961 = dma.vmem_to_hbm [thread:$0]  (%p1185_p4), %s1302_s24, 128, %s1300_s29, %s644_s7  }
 0x420 PF: > { %p967_p2 = scmp.ge.s32.totalorder %s1107_s23, 2  ;;  %s670_s17 = sand.u32 1, %s1087_s18  }
 0x421   : > { %s671_s25 = scalar_lea.sflag [#allocation7], %s670_s17 }
 0x422   : > { %p964_p3 = pnand %p967_p2, %p1192_p8 }
 0x424   : > { %1082 = dma.done.wait (!%p964_p3), %s671_s25, 128  }
 0x425   : > { %1084 = vsyncadd (!%p964_p3), %s671_s25, 4294967168  ;;  %s18_s23 = sadd.s32 1, %s1107_s23   ;;  %s1355_s18 = smov %s1091_s19 }
 0x426   : > { %p15_p5 = scmp.ge.s32.totalorder %s18_s23, 4   ;;  %s1356_s19 = smov %s1095_s20 }
 0x427   : > { %s1357_s20 = smov %s1198_s6  ;;  %s1358_s21 = smov %s1103_s22 }
 0x428   : > { %s1359_s22 = smov %s1361_s26  ;;  %17 = sbr.rel (!%p15_p5) target bundleno = 4 (0x4), region = 89 }
 0x42f   :  { %676 = vsyncpa [#allocation7], 1 }
 0x430   :  { %678 = vsyncpa [#allocation7 + $0x1], 1 }

</bundles_post_ra>
